<compile_context>
chip_gen: v6e
topology: v6e:2x2x1
jax: 0.10.0
libtpu: 0.0.40
codegen_flags: <defaults>
</compile_context>

<pallas_src>
import jax
import jax.numpy as jnp
from jax.experimental import pallas as pl
from jax.experimental.pallas import tpu as pltpu

N_CH = 41      # n_inputs == n_outputs
SEQ = 256      # forced by nn.BatchNorm1d(256) applied to out.permute(0, 2, 1)
BN_EPS = 1e-5


def mfuse_kernel(x_ref, w_ref, bias_ref, gb_ref, o_ref):
    # x_ref:    (B, C, TL)  input tile (length axis on lanes)
    # w_ref:    (C, C)      effective weight-normalized conv1 weight (kernel_size=1 squeezed)
    # bias_ref: (C, 1)      conv1 bias
    # gb_ref:   (2, TL)     row 0 = BN gamma tile, row 1 = BN beta tile
    # o_ref:    (B, C, TL)  output tile, each slab written exactly once
    B, C, L = x_ref.shape
    w = w_ref[...]
    bias = bias_ref[...]                 # (C, 1), broadcasts along lanes
    gamma = gb_ref[0:1, :]               # (1, L)
    beta = gb_ref[1:2, :]                # (1, L)

    # --- Pass 1: one wide matmul, batches side by side along lanes -> (C, B*L) ---
    xcat = jnp.concatenate([x_ref[b] for b in range(B)], axis=1)
    y = jnp.dot(w, xcat, preferred_element_type=jnp.float32)
    y = jnp.maximum(y + bias, 0.0)

    # --- BN statistics (per sequence position, reduced over batch & channel) ---
    cs = jnp.sum(y, axis=0, keepdims=True)        # (1, B*L)
    css = jnp.sum(y * y, axis=0, keepdims=True)   # (1, B*L)
    s = cs[:, 0:L]
    ss = css[:, 0:L]
    for b in range(1, B):
        s = s + cs[:, b * L:(b + 1) * L]
        ss = ss + css[:, b * L:(b + 1) * L]
    inv_cnt = 1.0 / float(B * C)
    mean = s * inv_cnt                            # (1, L) biased (training-mode) stats
    var = ss * inv_cnt - mean * mean
    scale = gamma * jax.lax.rsqrt(var + BN_EPS)
    shift = beta - mean * scale

    # --- BN affine, kept as per-batch (C, L) SSA values (no VMEM round trips) ---
    ybn = [y[:, b * L:(b + 1) * L] * scale + shift for b in range(B)]

    if B == 2:
        # nn.Softmax() over dim 0 with two batches == sigmoid of the pairwise difference.
        d = ybn[0] - ybn[1]
        c0 = 0.5 * (jnp.tanh(0.5 * d) + 1.0)      # sigmoid(d), via tanh (single EUP op)
        o_ref[0] = jnp.tanh(c0 * ybn[0]).astype(o_ref.dtype)
        o_ref[1] = jnp.tanh((1.0 - c0) * ybn[1]).astype(o_ref.dtype)
    else:
        # General softmax-over-batch path (numerically stabilized).
        m = ybn[0]
        for b in range(1, B):
            m = jnp.maximum(m, ybn[b])
        es = [jnp.exp(yb - m) for yb in ybn]
        denom = es[0]
        for b in range(1, B):
            denom = denom + es[b]
        inv = pl.reciprocal(denom, approx=True)   # one reciprocal per (c, l)
        for b in range(B):
            o_ref[b] = jnp.tanh(es[b] * inv * ybn[b]).astype(o_ref.dtype)


def _pick_length_tile():
    # v7x has two TensorCores per chip: keep two parallel 128-wide blocks (one per core).
    # v5e / v6e are single-TC: one 256-wide block halves per-step overhead.
    try:
        kind = jax.devices()[0].device_kind.lower()
    except Exception:
        kind = ""
    return 128 if "v7" in kind else 256


def mfuse_forward(x, w, bias, gamma, beta):
    B, C, L_total = x.shape
    assert C == N_CH and L_total == SEQ
    tl = _pick_length_tile()
    grid = (SEQ // tl,)

    # BN affine params packed into one small (2, SEQ) array (one per-step DMA instead of two).
    gb = jnp.stack([gamma, beta], axis=0).astype(jnp.float32)
    bias2 = bias.reshape(N_CH, 1).astype(jnp.float32)

    if B == 2:
        trans = 3 * N_CH * SEQ + SEQ
    else:
        trans = (2 * B + 1) * N_CH * SEQ + N_CH * SEQ + SEQ
    cost = pl.CostEstimate(
        flops=2 * B * N_CH * N_CH * SEQ + 12 * B * N_CH * SEQ,
        transcendentals=int(trans),
        bytes_accessed=2 * B * N_CH * SEQ * x.dtype.itemsize
        + N_CH * N_CH * w.dtype.itemsize + (N_CH + 2 * SEQ) * 4,
    )

    return pl.pallas_call(
        mfuse_kernel,
        out_shape=jax.ShapeDtypeStruct((B, N_CH, SEQ), x.dtype),
        grid_spec=pltpu.PrefetchScalarGridSpec(
            num_scalar_prefetch=0,
            grid=grid,
            in_specs=[
                pl.BlockSpec((B, N_CH, tl), lambda l: (0, 0, l)),   # x
                pl.BlockSpec((N_CH, N_CH), lambda l: (0, 0)),       # conv1 weight (resident)
                pl.BlockSpec((N_CH, 1), lambda l: (0, 0)),          # conv1 bias   (resident)
                pl.BlockSpec((2, tl), lambda l: (0, l)),            # [gamma; beta] tile
            ],
            out_specs=pl.BlockSpec((B, N_CH, tl), lambda l: (0, 0, l)),
        ),
        compiler_params=pltpu.CompilerParams(
            dimension_semantics=("parallel",),
        ),
        cost_estimate=cost,
    )(x, w, bias2, gb)


def mfuse_reference(x, w, bias, gamma, beta):
    # pure-JAX reference for a correctness sanity check
    y = jnp.einsum("oi,bil->bol", w, x) + bias[None, :, None]
    y = jnp.maximum(y, 0.0)
    mean = jnp.mean(y, axis=(0, 1), keepdims=True)
    var = jnp.mean((y - mean) ** 2, axis=(0, 1), keepdims=True)
    ybn = (y - mean) / jnp.sqrt(var + BN_EPS) * gamma[None, None, :] + beta[None, None, :]
    coff = jax.nn.softmax(ybn, axis=0)
    return jnp.tanh(coff * ybn)


if __name__ == "__main__":
    key = jax.random.PRNGKey(0)
    kx, kv, kb = jax.random.split(key, 3)

    B = 2
    x = jax.random.normal(kx, (B, N_CH, SEQ), jnp.float32)

    # weight_norm(Conv1d): w = g * v / ||v|| (norm over in-channel & kernel dims, per out channel).
    # At construction g = ||v||, so the effective weight equals v; we keep the reparam explicit.
    v = jax.random.normal(kv, (N_CH, N_CH, 1), jnp.float32) * 0.1
    v_norm = jnp.sqrt(jnp.sum(v * v, axis=(1, 2), keepdims=True))
    g = v_norm
    w = (g * v / v_norm)[:, :, 0]                     # (41, 41), kernel_size=1 squeezed
    bias = jax.random.normal(kb, (N_CH,), jnp.float32) * 0.05

    gamma = jnp.ones((SEQ,), jnp.float32)             # BatchNorm1d default affine init
    beta = jnp.zeros((SEQ,), jnp.float32)

    # TODO(synk): dropout1/dropout2, conv2/net2, sigmoid, leakyReLUs exist in __init__ but are
    # unused by forward(), so they are intentionally not implemented.

    out = mfuse_forward(x, w, bias, gamma, beta)
    jax.block_until_ready(out)

    ref = mfuse_reference(x, w, bias, gamma, beta)
    assert out.shape == (B, N_CH, SEQ)
    assert jnp.allclose(out, ref, atol=2e-3, rtol=2e-3)

    print("KERNEL_OK")
</pallas_src>

<mosaic_0001>
module attributes {stable_mosaic.version = 11 : i64} {
  func.func @mfuse_kernel(%arg0: i32, %arg1: memref<2x41x256xf32, #tpu.memory_space<vmem>>, %arg2: memref<41x41xf32, #tpu.memory_space<vmem>>, %arg3: memref<41x1xf32, #tpu.memory_space<vmem>>, %arg4: memref<2x256xf32, #tpu.memory_space<vmem>>, %arg5: memref<2x41x256xf32, #tpu.memory_space<vmem>>) attributes {dimension_semantics = [#tpu.dimension_semantics<parallel>], iteration_bounds = array<i64: 1>, scalar_prefetch = 0 : i64, scratch_operands = 0 : i64, tpu.core_type = #tpu.core_type<tc>, window_params = [{transform_indices = @transform_0, window_bounds = array<i64: 2, 41, 256>}, {pipeline_mode = #tpu.pipeline_mode<synchronous>, transform_indices = @transform_1, window_bounds = array<i64: 41, 41>}, {pipeline_mode = #tpu.pipeline_mode<synchronous>, transform_indices = @transform_2, window_bounds = array<i64: 41, 1>}, {transform_indices = @transform_3, window_bounds = array<i64: 2, 256>}, {transform_indices = @transform_4, window_bounds = array<i64: 2, 41, 256>}]} {
    %c0 = arith.constant 0 : index
    %c0_0 = arith.constant 0 : index
    %0 = vector.load %arg2[%c0, %c0_0] : memref<41x41xf32, #tpu.memory_space<vmem>>, vector<41x41xf32>
    %c0_1 = arith.constant 0 : index
    %c0_2 = arith.constant 0 : index
    %1 = vector.load %arg3[%c0_1, %c0_2] : memref<41x1xf32, #tpu.memory_space<vmem>>, vector<41x1xf32>
    %c0_3 = arith.constant 0 : index
    %c0_4 = arith.constant 0 : index
    %2 = vector.load %arg4[%c0_3, %c0_4] : memref<2x256xf32, #tpu.memory_space<vmem>>, vector<1x256xf32>
    %c1 = arith.constant 1 : index
    %c0_5 = arith.constant 0 : index
    %3 = vector.load %arg4[%c1, %c0_5] : memref<2x256xf32, #tpu.memory_space<vmem>>, vector<1x256xf32>
    %c0_6 = arith.constant 0 : index
    %c0_7 = arith.constant 0 : index
    %c0_8 = arith.constant 0 : index
    %4 = vector.load %arg1[%c0_6, %c0_7, %c0_8] : memref<2x41x256xf32, #tpu.memory_space<vmem>>, vector<1x41x256xf32>
    %5 = vector.shape_cast %4 : vector<1x41x256xf32> to vector<41x256xf32>
    %c1_9 = arith.constant 1 : index
    %c0_10 = arith.constant 0 : index
    %c0_11 = arith.constant 0 : index
    %6 = vector.load %arg1[%c1_9, %c0_10, %c0_11] : memref<2x41x256xf32, #tpu.memory_space<vmem>>, vector<1x41x256xf32>
    %7 = vector.shape_cast %6 : vector<1x41x256xf32> to vector<41x256xf32>
    %8 = tpu.concatenate %5, %7 in 1 : vector<41x256xf32>, vector<41x256xf32> -> vector<41x512xf32>
    %cst = arith.constant dense<0.000000e+00> : vector<41x512xf32>
    %9 = tpu.matmul %0, %8, %cst {dimension_numbers = #tpu.dot_dimension_numbers<[1], [0], [0], [1], [0, 0, 1, 1], [], []>} : vector<41x41xf32>, vector<41x512xf32>, vector<41x512xf32> -> vector<41x512xf32>
    %10 = vector.broadcast %1 : vector<41x1xf32> to vector<41x512xf32>
    %11 = arith.addf %9, %10 : vector<41x512xf32>
    %cst_12 = arith.constant 0.000000e+00 : f32
    %12 = vector.broadcast %cst_12 : f32 to vector<41x512xf32>
    %13 = arith.maximumf %11, %12 : vector<41x512xf32>
    %cst_13 = arith.constant dense<0.000000e+00> : vector<512xf32>
    %14 = vector.multi_reduction <add>, %13, %cst_13 [0] : vector<41x512xf32> to vector<512xf32>
    %15 = vector.shape_cast %14 : vector<512xf32> to vector<1x512xf32>
    %16 = arith.mulf %13, %13 : vector<41x512xf32>
    %cst_14 = arith.constant dense<0.000000e+00> : vector<512xf32>
    %17 = vector.multi_reduction <add>, %16, %cst_14 [0] : vector<41x512xf32> to vector<512xf32>
    %18 = vector.shape_cast %17 : vector<512xf32> to vector<1x512xf32>
    %19 = vector.extract_strided_slice %15 {offsets = [0, 0], sizes = [1, 256], strides = [1, 1]} : vector<1x512xf32> to vector<1x256xf32>
    %20 = vector.extract_strided_slice %18 {offsets = [0, 0], sizes = [1, 256], strides = [1, 1]} : vector<1x512xf32> to vector<1x256xf32>
    %21 = vector.extract_strided_slice %15 {offsets = [0, 256], sizes = [1, 256], strides = [1, 1]} : vector<1x512xf32> to vector<1x256xf32>
    %22 = arith.addf %19, %21 : vector<1x256xf32>
    %23 = vector.extract_strided_slice %18 {offsets = [0, 256], sizes = [1, 256], strides = [1, 1]} : vector<1x512xf32> to vector<1x256xf32>
    %24 = arith.addf %20, %23 : vector<1x256xf32>
    %cst_15 = arith.constant 0.0121951215 : f32
    %25 = vector.broadcast %cst_15 : f32 to vector<1x256xf32>
    %26 = arith.mulf %22, %25 : vector<1x256xf32>
    %cst_16 = arith.constant 0.0121951215 : f32
    %27 = vector.broadcast %cst_16 : f32 to vector<1x256xf32>
    %28 = arith.mulf %24, %27 : vector<1x256xf32>
    %29 = arith.mulf %26, %26 : vector<1x256xf32>
    %30 = arith.subf %28, %29 : vector<1x256xf32>
    %cst_17 = arith.constant 9.99999974E-6 : f32
    %31 = vector.broadcast %cst_17 : f32 to vector<1x256xf32>
    %32 = arith.addf %30, %31 : vector<1x256xf32>
    %33 = math.rsqrt %32 : vector<1x256xf32>
    %34 = arith.mulf %2, %33 : vector<1x256xf32>
    %35 = arith.mulf %26, %34 : vector<1x256xf32>
    %36 = arith.subf %3, %35 : vector<1x256xf32>
    %37 = vector.extract_strided_slice %13 {offsets = [0, 0], sizes = [41, 256], strides = [1, 1]} : vector<41x512xf32> to vector<41x256xf32>
    %38 = vector.broadcast %34 : vector<1x256xf32> to vector<41x256xf32>
    %39 = arith.mulf %37, %38 : vector<41x256xf32>
    %40 = vector.broadcast %36 : vector<1x256xf32> to vector<41x256xf32>
    %41 = arith.addf %39, %40 : vector<41x256xf32>
    %42 = vector.extract_strided_slice %13 {offsets = [0, 256], sizes = [41, 256], strides = [1, 1]} : vector<41x512xf32> to vector<41x256xf32>
    %43 = vector.broadcast %34 : vector<1x256xf32> to vector<41x256xf32>
    %44 = arith.mulf %42, %43 : vector<41x256xf32>
    %45 = vector.broadcast %36 : vector<1x256xf32> to vector<41x256xf32>
    %46 = arith.addf %44, %45 : vector<41x256xf32>
    %47 = arith.subf %41, %46 : vector<41x256xf32>
    %cst_18 = arith.constant 5.000000e-01 : f32
    %48 = vector.broadcast %cst_18 : f32 to vector<41x256xf32>
    %49 = arith.mulf %48, %47 : vector<41x256xf32>
    %50 = math.tanh %49 : vector<41x256xf32>
    %cst_19 = arith.constant 1.000000e+00 : f32
    %51 = vector.broadcast %cst_19 : f32 to vector<41x256xf32>
    %52 = arith.addf %50, %51 : vector<41x256xf32>
    %cst_20 = arith.constant 5.000000e-01 : f32
    %53 = vector.broadcast %cst_20 : f32 to vector<41x256xf32>
    %54 = arith.mulf %53, %52 : vector<41x256xf32>
    %55 = arith.mulf %54, %41 : vector<41x256xf32>
    %56 = math.tanh %55 : vector<41x256xf32>
    %c0_21 = arith.constant 0 : index
    %c0_22 = arith.constant 0 : index
    %c0_23 = arith.constant 0 : index
    %57 = vector.load %arg5[%c0_21, %c0_22, %c0_23] : memref<2x41x256xf32, #tpu.memory_space<vmem>>, vector<1x41x256xf32>
    %58 = vector.shape_cast %57 : vector<1x41x256xf32> to vector<41x256xf32>
    %59 = vector.shape_cast %56 : vector<41x256xf32> to vector<1x41x256xf32>
    tpu.vector_store %arg5[%c0_21, %c0_22, %c0_23], %59 {strides = array<i32>} : memref<2x41x256xf32, #tpu.memory_space<vmem>>, vector<1x41x256xf32>,
    %cst_24 = arith.constant 1.000000e+00 : f32
    %60 = vector.broadcast %cst_24 : f32 to vector<41x256xf32>
    %61 = arith.subf %60, %54 : vector<41x256xf32>
    %62 = arith.mulf %61, %46 : vector<41x256xf32>
    %63 = math.tanh %62 : vector<41x256xf32>
    %c1_25 = arith.constant 1 : index
    %c0_26 = arith.constant 0 : index
    %c0_27 = arith.constant 0 : index
    %64 = vector.load %arg5[%c1_25, %c0_26, %c0_27] : memref<2x41x256xf32, #tpu.memory_space<vmem>>, vector<1x41x256xf32>
    %65 = vector.shape_cast %64 : vector<1x41x256xf32> to vector<41x256xf32>
    %66 = vector.shape_cast %63 : vector<41x256xf32> to vector<1x41x256xf32>
    tpu.vector_store %arg5[%c1_25, %c0_26, %c0_27], %66 {strides = array<i32>} : memref<2x41x256xf32, #tpu.memory_space<vmem>>, vector<1x41x256xf32>,
    return
  }
  func.func @transform_0(%arg0: i32) -> (i32, i32, i32) {
    %c0_i32 = arith.constant 0 : i32
    %c0_i32_0 = arith.constant 0 : i32
    %c0_i32_1 = arith.constant 0 : i32
    return %c0_i32, %c0_i32_0, %arg0 : i32, i32, i32
  }
  func.func @transform_1(%arg0: i32) -> (i32, i32) {
    %c0_i32 = arith.constant 0 : i32
    %c0_i32_0 = arith.constant 0 : i32
    %c0_i32_1 = arith.constant 0 : i32
    return %c0_i32, %c0_i32_0 : i32, i32
  }
  func.func @transform_2(%arg0: i32) -> (i32, i32) {
    %c0_i32 = arith.constant 0 : i32
    %c0_i32_0 = arith.constant 0 : i32
    %c0_i32_1 = arith.constant 0 : i32
    return %c0_i32, %c0_i32_0 : i32, i32
  }
  func.func @transform_3(%arg0: i32) -> (i32, i32) {
    %c0_i32 = arith.constant 0 : i32
    %c0_i32_0 = arith.constant 0 : i32
    return %c0_i32, %arg0 : i32, i32
  }
  func.func @transform_4(%arg0: i32) -> (i32, i32, i32) {
    %c0_i32 = arith.constant 0 : i32
    %c0_i32_0 = arith.constant 0 : i32
    %c0_i32_1 = arith.constant 0 : i32
    return %c0_i32, %c0_i32_0, %arg0 : i32, i32, i32
  }
}

</mosaic_0001>

<bundles_post_ra>
// kernel: tpu_custom_call.1
= control target key start
LH: loop header
LB: loop body
LE: loop exit
PB: predicated region body
PF: predicated region fallthrough
CT: control target
= control target key end

     0   :  { %vm106_vm0 = vcmask 1040384   ;;  %v862_v3 = vmov 0.0   ;;  %vm87_vm1 = vcmask 334848   ;;  %v863_v29 = vmov 0   ;;  %s1356_s0 = inlined_call_operand.vmem [shape: f32[2,41,256], index: 0, kind: input, shape index: {}]   ;;  %s1357_s1 = inlined_call_operand.vmem [shape: f32[41,41], index: 1, kind: input, shape index: {}]   ;;  %s1358_s2 = inlined_call_operand.vmem [shape: f32[41,1], index: 2, kind: input, shape index: {}]   ;;  %s1359_s3 = inlined_call_operand.vmem [shape: f32[2,256], index: 3, kind: input, shape index: {}]   ;;  %s1360_s4 = inlined_call_operand.vmem [shape: f32[2,41,256], index: 4, kind: output, shape index: {}]  }
   0x1   :  { %v43_v0 = vld [vmem:[%s1356_s0 + $0x58] sm:$0x1]  ;;  %v42_v2 = vld [vmem:[%s1356_s0 + $0x50] sm:$0x1]  ;;  %183 = vmatprep.mubr.f32.mxu0 %v862_v3  ;;  %284 = vmatprep.mubr.f32.mxu1 %v862_v3  ;;  %v41_v5 = vld [vmem:[%s1356_s0 + $0x48] sm:$0xff] }
   0x2   :  { %v752_v1 = vld [vmem:[%s1356_s0 + $0xb8] sm:$0x1]  ;;  %753 = vmatprep.subr.msk.mxu0 %vm106_vm0, %v43_v0  ;;  %v751_v4 = vld [vmem:[%s1356_s0 + $0xb0] sm:$0x1]  ;;  %v750_v6 = vld [vmem:[%s1356_s0 + $0xa8] sm:$0xff]  ;;  %784 = vset.pattern.permute.xlu0 %v863_v29 }
   0x3   :  { %761 = vmatprep.subr.msk.mxu1 %vm106_vm0, %v752_v1  ;;  %754 = vmatpush1.msk.msra.mxu0 %vm106_vm0, %v42_v2  ;;  %v40_v7 = vld [vmem:[%s1356_s0 + $0x40] sm:$0xff]  ;;  %v39_v9 = vld [vmem:[%s1356_s0 + $0x38] sm:$0xff]  ;;  %v38_v11 = vld [vmem:[%s1356_s0 + $0x30] sm:$0xff] }
   0x4   :  { %762 = vmatpush1.msk.msra.mxu1 %vm106_vm0, %v751_v4  ;;  %v749_v8 = vld [vmem:[%s1356_s0 + $0xa0] sm:$0xff]  ;;  %141 = vmatprep.subr.mxu0 %v41_v5  ;;  %v748_v10 = vld [vmem:[%s1356_s0 + $0x98] sm:$0xff]  ;;  %v747_v12 = vld [vmem:[%s1356_s0 + $0x90] sm:$0xff] }
   0x5   :  { %242 = vmatprep.subr.mxu1 %v750_v6  ;;  %142 = vmatpush1.msra.mxu0 %v40_v7  ;;  %v37_v13 = vld [vmem:[%s1356_s0 + $0x28] sm:$0xff]  ;;  %v36_v15 = vld [vmem:[%s1356_s0 + $0x20] sm:$0xff]  ;;  %v35_v17 = vld [vmem:[%s1356_s0 + $0x18] sm:$0xff] }
   0x6   :  { %243 = vmatpush1.msra.mxu1 %v749_v8  ;;  %v746_v14 = vld [vmem:[%s1356_s0 + $0x88] sm:$0xff]  ;;  %143 = vmatprep.subr.mxu0 %v39_v9  ;;  %v745_v16 = vld [vmem:[%s1356_s0 + $0x80] sm:$0xff]  ;;  %v744_v18 = vld [vmem:[%s1356_s0 + $0x78] sm:$0xff] }
   0x7   :  { %244 = vmatprep.subr.mxu1 %v748_v10  ;;  %144 = vmatpush1.msra.mxu0 %v38_v11  ;;  %v34_v19 = vld [vmem:[%s1356_s0 + $0x10] sm:$0xff]  ;;  %v33_v21 = vld [vmem:[%s1356_s0 + $0x8] sm:$0xff]  ;;  %v32_v23 = vld [vmem:[%s1356_s0] sm:$0xff] }
   0x8   :  { %245 = vmatpush1.msra.mxu1 %v747_v12  ;;  %145 = vmatprep.subr.mxu0 %v37_v13  ;;  %v743_v20 = vld [vmem:[%s1356_s0 + $0x70] sm:$0xff]  ;;  %v742_v22 = vld [vmem:[%s1356_s0 + $0x68] sm:$0xff]  ;;  %v741_v24 = vld [vmem:[%s1356_s0 + $0x60] sm:$0xff] }
   0x9   :  { %246 = vmatprep.subr.mxu1 %v746_v14  ;;  %146 = vmatpush1.msra.mxu0 %v36_v15  ;;  %v17_v25 = vld [vmem:[%s1357_s1] sm:$0xff]  ;;  %v25_v27 = vld [vmem:[%s1358_s2 + $0x10] sm:$0xff]  ;;  %v18_v28 = vld [vmem:[%s1357_s1 + $0x8] sm:$0xff] }
   0xa   :  { %247 = vmatpush1.msra.mxu1 %v745_v16  ;;  %147 = vmatprep.subr.mxu0 %v35_v17  ;;  %v23_v26 = vld [vmem:[%s1358_s2] sm:$0xff]  ;;  %v24_v30 = vld [vmem:[%s1358_s2 + $0x8] sm:$0xff]  ;;  %v26_v31 = vld [vmem:[%s1358_s2 + $0x18] sm:$0xff] }
   0xb   :  { %248 = vmatprep.subr.mxu1 %v744_v18  ;;  %148 = vmatpush1.msra.mxu0 %v34_v19  ;;  %v19_v32 = vld [vmem:[%s1357_s1 + $0x10] sm:$0xff]  ;;  %v27_v33 = vld [vmem:[%s1358_s2 + $0x20] sm:$0xff]  ;;  %v28_v34 = vld [vmem:[%s1358_s2 + $0x28] sm:$0x1] }
   0xc   :  { %249 = vmatpush1.msra.mxu1 %v743_v20  ;;  %149 = vmatprep.subr.mxu0 %v33_v21  ;;  %v20_v35 = vld [vmem:[%s1357_s1 + $0x18] sm:$0xff]  ;;  %v21_v36 = vld [vmem:[%s1357_s1 + $0x20] sm:$0xff]  ;;  %v22_v37 = vld [vmem:[%s1357_s1 + $0x28] sm:$0x1] }
   0xd   :  { %250 = vmatprep.subr.mxu1 %v742_v22  ;;  %150 = vmatpush1.msra.mxu0 %v32_v23 }
   0xe   :  { %251 = vmatpush1.msra.mxu1 %v741_v24  ;;  %755 = vmatmul.mubr.msk.f32.vlgmr.msra.gmra.mxu0 %vm87_vm1, %v17_v25 }
   0xf   :  { %763 = vmatmul.mubr.msk.f32.vlgmr.msra.gmra.mxu1 %vm87_vm1, %v17_v25  ;;  %189 = vmatprep.mubr.f32.mxu0 %v862_v3 }
  0x10   :  { %290 = vmatprep.mubr.f32.mxu1 %v862_v3  ;;  %785 = vset.pattern.permute.xlu1 %v863_v29 }
  0x11   :  { %59 = vperm.xlu0 %784, %v23_v26   ;;  %69 = vperm.xlu1 %785, %v25_v27  }
  0x12   :  { %756 = vmatmul.mubr.msk.f32.gmra.mxu0 %vm87_vm1, %v18_v28 }
  0x13   :  { %764 = vmatmul.mubr.msk.f32.gmra.mxu1 %vm87_vm1, %v18_v28  ;;  %195 = vmatprep.mubr.f32.mxu0 %v862_v3 }
  0x14   :  { %296 = vmatprep.mubr.f32.mxu1 %v862_v3 }
  0x15   :  { %64 = vperm.xlu0 %784, %v24_v30   ;;  %74 = vperm.xlu1 %785, %v26_v31  }
  0x16   :  { %757 = vmatmul.mubr.msk.f32.gmra.mxu0 %vm87_vm1, %v19_v32 }
  0x17   :  { %765 = vmatmul.mubr.msk.f32.gmra.mxu1 %vm87_vm1, %v19_v32  ;;  %201 = vmatprep.mubr.f32.mxu0 %v862_v3 }
  0x18   :  { %302 = vmatprep.mubr.f32.mxu1 %v862_v3 }
  0x19   :  { %79 = vperm.xlu0 %784, %v27_v33   ;;  %84 = vperm.xlu1 %785, %v28_v34  }
  0x1a   :  { %758 = vmatmul.mubr.msk.f32.gmra.mxu0 %vm87_vm1, %v20_v35 }
  0x1b   :  { %766 = vmatmul.mubr.msk.f32.gmra.mxu1 %vm87_vm1, %v20_v35  ;;  %207 = vmatprep.mubr.f32.mxu0 %v862_v3 }
  0x1c   :  { %308 = vmatprep.mubr.f32.mxu1 %v862_v3 }
  0x1e   :  { %759 = vmatmul.mubr.msk.f32.gmra.mxu0 %vm87_vm1, %v21_v36 }
  0x1f   :  { %767 = vmatmul.mubr.msk.f32.gmra.mxu1 %vm87_vm1, %v21_v36  ;;  %213 = vmatprep.mubr.f32.mxu0 %v862_v3 }
  0x20   :  { %314 = vmatprep.mubr.f32.mxu1 %v862_v3 }
  0x22   :  { %760 = vmatmul.mubr.msk.f32.gmra.mxu0 %vm87_vm1, %v22_v37 }
  0x23   :  { %768 = vmatmul.mubr.msk.f32.gmra.mxu1 %vm87_vm1, %v22_v37 }
  0x8c   :  { %v60_v38 = vpop.permute.xlu0 %59  ;;  %v70_v58 = vpop.permute.xlu1 %69 }
  0x90   :  { %v65_v47 = vpop.permute.xlu0 %64  ;;  %v75_v25 = vpop.permute.xlu1 %74 }
  0xce   :  { %v185_v39 = vpop.f32.mrf.mxu0 }
  0xcf   :  { %v286_v40 = vpop.f32.mrf.mxu1  ;;  %v186_v41 = vadd.f32 %v185_v39, %v60_v38 }
  0xd0   :  { %v287_v42 = vadd.f32 %v286_v40, %v60_v38  ;;  %v187_v43 = vpop.f32.mrf.mxu0 }
  0xd1   :  { %v288_v44 = vpop.f32.mrf.mxu1  ;;  %v188_v45 = vadd.f32 %v187_v43, %v60_v38  ;;  %v1026_v48 = vmax.f32 %v186_v41, 0.0 }
  0xd2   :  { %v289_v46 = vadd.f32 %v288_v44, %v60_v38  ;;  %v1028_v49 = vmax.f32 %v287_v42, 0.0  ;;  %v191_v50 = vpop.f32.mrf.mxu0 }
  0xd3   :  { %v292_v51 = vpop.f32.mrf.mxu1  ;;  %v1030_v52 = vmax.f32 %v188_v45, 0.0  ;;  %v192_v54 = vadd.f32 %v191_v50, %v65_v47  ;;  %v393_v61 = vmul.f32 %v1026_v48, %v1026_v48  ;;  %v80_v50 = vpop.permute.xlu0 %79 }
  0xd4   :  { %v1032_v53 = vmax.f32 %v289_v46, 0.0  ;;  %v293_v55 = vadd.f32 %v292_v51, %v65_v47  ;;  %v193_v56 = vpop.f32.mrf.mxu0  ;;  %v395_v62 = vmul.f32 %v1028_v49, %v1028_v49 }
  0xd5   :  { %v294_v57 = vpop.f32.mrf.mxu1  ;;  %v194_v59 = vadd.f32 %v193_v56, %v65_v47  ;;  %v1038_v63 = vmax.f32 %v192_v54, 0.0  ;;  %v394_v7 = vmul.f32 %v1030_v52, %v1030_v52 }
  0xd6   :  { %v295_v60 = vadd.f32 %v294_v57, %v65_v47  ;;  %v1040_v0 = vmax.f32 %v293_v55, 0.0  ;;  %v197_v1 = vpop.f32.mrf.mxu0  ;;  %v396_v8 = vmul.f32 %v1032_v53, %v1032_v53 }
  0xd7   :  { %v298_v2 = vpop.f32.mrf.mxu1  ;;  %v1042_v3 = vmax.f32 %v194_v59, 0.0  ;;  %v198_v5 = vadd.f32 %v197_v1, %v70_v58  ;;  %v397_v9 = vmul.f32 %v1038_v63, %v1038_v63  ;;  %v345_v13 = vadd.f32 %v1038_v63, %v1026_v48 }
  0xd8   :  { %v1044_v4 = vmax.f32 %v295_v60, 0.0  ;;  %v299_v6 = vadd.f32 %v298_v2, %v70_v58  ;;  %v399_v10 = vmul.f32 %v1040_v0, %v1040_v0  ;;  %v199_v11 = vpop.f32.mrf.mxu0  ;;  %v369_v14 = vadd.f32 %v1040_v0, %v1028_v49 }
  0xd9   :  { %v300_v12 = vpop.f32.mrf.mxu1  ;;  %v398_v15 = vmul.f32 %v1042_v3, %v1042_v3  ;;  %v357_v17 = vadd.f32 %v1042_v3, %v1030_v52  ;;  %v1066_v19 = vmax.f32 %v198_v5, 0.0  ;;  %v417_v23 = vadd.f32 %v397_v9, %v393_v61 }
  0xda   :  { %v400_v16 = vmul.f32 %v1044_v4, %v1044_v4  ;;  %v381_v18 = vadd.f32 %v1044_v4, %v1032_v53  ;;  %v1068_v20 = vmax.f32 %v299_v6, 0.0  ;;  %v203_v21 = vpop.f32.mrf.mxu0  ;;  %v441_v24 = vadd.f32 %v399_v10, %v395_v62 }
  0xdb   :  { %v304_v22 = vpop.f32.mrf.mxu1  ;;  %v200_v26 = vadd.f32 %v199_v11, %v70_v58  ;;  %v301_v27 = vadd.f32 %v300_v12, %v70_v58  ;;  %v429_v28 = vadd.f32 %v398_v15, %v394_v7  ;;  %v401_v30 = vmul.f32 %v1066_v19, %v1066_v19 }
  0xdc   :  { %v453_v29 = vadd.f32 %v400_v16, %v396_v8  ;;  %v403_v31 = vmul.f32 %v1068_v20, %v1068_v20  ;;  %v205_v32 = vpop.f32.mrf.mxu0  ;;  %v204_v36 = vadd.f32 %v203_v21, %v75_v25  ;;  %v305_v37 = vadd.f32 %v304_v22, %v75_v25 }
  0xdd   :  { %v306_v33 = vpop.f32.mrf.mxu1  ;;  %v1074_v34 = vmax.f32 %v200_v26, 0.0  ;;  %v1076_v35 = vmax.f32 %v301_v27, 0.0  ;;  %v346_v38 = vadd.f32 %v345_v13, %v1066_v19  ;;  %v370_v39 = vadd.f32 %v369_v14, %v1068_v20 }
  0xde   :  { %v206_v40 = vadd.f32 %v205_v32, %v75_v25  ;;  %v307_v41 = vadd.f32 %v306_v33, %v75_v25  ;;  %v209_v42 = vpop.f32.mrf.mxu0  ;;  %v418_v44 = vadd.f32 %v417_v23, %v401_v30  ;;  %v442_v45 = vadd.f32 %v441_v24, %v403_v31  ;;  %v85_v25 = vpop.permute.xlu1 %84 }
  0xdf   :  { %v310_v43 = vpop.f32.mrf.mxu1  ;;  %v402_v46 = vmul.f32 %v1074_v34, %v1074_v34  ;;  %v404_v47 = vmul.f32 %v1076_v35, %v1076_v35  ;;  %v1084_v51 = vmax.f32 %v204_v36, 0.0  ;;  %v1086_v54 = vmax.f32 %v305_v37, 0.0 }
  0xe0   :  { %v1088_v55 = vmax.f32 %v206_v40, 0.0  ;;  %v1090_v56 = vmax.f32 %v307_v41, 0.0  ;;  %v211_v57 = vpop.f32.mrf.mxu0  ;;  %v358_v59 = vadd.f32 %v357_v17, %v1074_v34  ;;  %v382_v60 = vadd.f32 %v381_v18, %v1076_v35 }
  0xe1   :  { %v312_v58 = vpop.f32.mrf.mxu1  ;;  %v210_v61 = vadd.f32 %v209_v42, %v80_v50  ;;  %v311_v62 = vadd.f32 %v310_v43, %v80_v50  ;;  %v430_v1 = vadd.f32 %v429_v28, %v402_v46  ;;  %v454_v2 = vadd.f32 %v453_v29, %v404_v47 }
  0xe2   :  { %v405_v5 = vmul.f32 %v1084_v51, %v1084_v51  ;;  %v407_v6 = vmul.f32 %v1086_v54, %v1086_v54  ;;  %v215_v7 = vpop.f32.mrf.mxu0  ;;  %v347_v9 = vadd.f32 %v346_v38, %v1084_v51  ;;  %v371_v10 = vadd.f32 %v370_v39, %v1086_v54 }
  0xe3   :  { %v316_v8 = vpop.f32.mrf.mxu1  ;;  %v406_v11 = vmul.f32 %v1088_v55, %v1088_v55  ;;  %v408_v12 = vmul.f32 %v1090_v56, %v1090_v56  ;;  %v359_v13 = vadd.f32 %v358_v59, %v1088_v55  ;;  %v383_v14 = vadd.f32 %v382_v60, %v1090_v56 }
  0xe4   :  { %v1106_v15 = vmax.f32 %v210_v61, 0.0  ;;  %v1108_v16 = vmax.f32 %v311_v62, 0.0  ;;  %v419_v17 = vadd.f32 %v418_v44, %v405_v5  ;;  %v443_v18 = vadd.f32 %v442_v45, %v407_v6  ;;  %v217_v23 = vpop.f32.mrf.mxu0 }
  0xe5   :  { %v212_v21 = vadd.f32 %v211_v57, %v80_v50  ;;  %v313_v22 = vadd.f32 %v312_v58, %v80_v50  ;;  %v318_v24 = vpop.f32.mrf.mxu1  ;;  %v431_v26 = vadd.f32 %v430_v1, %v406_v11  ;;  %v455_v27 = vadd.f32 %v454_v2, %v408_v12 }
  0xe6   :  { %v409_v28 = vmul.f32 %v1106_v15, %v1106_v15  ;;  %v411_v29 = vmul.f32 %v1108_v16, %v1108_v16  ;;  %v216_v32 = vadd.f32 %v215_v7, %v85_v25  ;;  %v317_v33 = vadd.f32 %v316_v8, %v85_v25 }
  0xe7   :  { %v1114_v30 = vmax.f32 %v212_v21, 0.0  ;;  %v1116_v31 = vmax.f32 %v313_v22, 0.0  ;;  %v348_v36 = vadd.f32 %v347_v9, %v1106_v15  ;;  %v372_v37 = vadd.f32 %v371_v10, %v1108_v16 }
  0xe8   :  { %v218_v38 = vadd.f32 %v217_v23, %v85_v25  ;;  %v319_v39 = vadd.f32 %v318_v24, %v85_v25  ;;  %v420_v40 = vadd.f32 %v419_v17, %v409_v28  ;;  %v444_v41 = vadd.f32 %v443_v18, %v411_v29 }
  0xe9   :  { %v410_v42 = vmul.f32 %v1114_v30, %v1114_v30  ;;  %v412_v43 = vmul.f32 %v1116_v31, %v1116_v31  ;;  %v1124_v44 = vmax.f32 %v216_v32, 0.0  ;;  %v1126_v45 = vmax.f32 %v317_v33, 0.0 }
  0xea   :  { %v1128_v46 = vmax.f32 %v218_v38, 0.0  ;;  %v1130_v47 = vmax.f32 %v319_v39, 0.0  ;;  %v360_v50 = vadd.f32 %v359_v13, %v1114_v30  ;;  %v384_v58 = vadd.f32 %v383_v14, %v1116_v31 }
  0xeb   :  { %v432_v57 = vadd.f32 %v431_v26, %v410_v42  ;;  %v456_v59 = vadd.f32 %v455_v27, %v412_v43  ;;  %v349_v60 = vsel %vm106_vm0, %v1124_v44, 0.0  ;;  %v413_v61 = vmul.f32 %v1124_v44, %v1124_v44 }
  0xec   :  { %v373_v62 = vsel %vm106_vm0, %v1126_v45, 0.0  ;;  %v415_v1 = vmul.f32 %v1126_v45, %v1126_v45  ;;  %v350_v2 = vadd.f32 %v349_v60, %v348_v36  ;;  %v361_v6 = vsel %vm106_vm0, %v1128_v46, 0.0 }
  0xed   :  { %v374_v5 = vadd.f32 %v373_v62, %v372_v37  ;;  %v414_v7 = vmul.f32 %v1128_v46, %v1128_v46  ;;  %v421_v8 = vsel %vm106_vm0, %v413_v61, 0.0  ;;  %v362_v10 = vadd.f32 %v361_v6, %v360_v50 }
  0xee   :  { %v445_v9 = vsel %vm106_vm0, %v415_v1, 0.0  ;;  %v385_v11 = vsel %vm106_vm0, %v1130_v47, 0.0  ;;  %v351_v12 = vrot.slane %v350_v2, 4  ;;  %v422_v13 = vadd.f32 %v421_v8, %v420_v40 }
  0xef   :  { %v375_v14 = vrot.slane %v374_v5, 4  ;;  %v446_v17 = vadd.f32 %v445_v9, %v444_v41  ;;  %v363_v18 = vrot.slane %v362_v10, 4  ;;  %v433_v21 = vsel %vm106_vm0, %v414_v7, 0.0 }
  0xf0   :  { %v386_v22 = vadd.f32 %v385_v11, %v384_v58  ;;  %v416_v23 = vmul.f32 %v1130_v47, %v1130_v47  ;;  %v352_v24 = vadd.f32 %v351_v12, %v350_v2  ;;  %v423_v25 = vrot.slane %v422_v13, 4 }
  0xf1   :  { %v376_v26 = vadd.f32 %v375_v14, %v374_v5  ;;  %v447_v27 = vrot.slane %v446_v17, 4  ;;  %v364_v28 = vadd.f32 %v363_v18, %v362_v10  ;;  %v434_v29 = vadd.f32 %v433_v21, %v432_v57 }
  0xf2   :  { %v387_v32 = vrot.slane %v386_v22, 4  ;;  %v457_v33 = vsel %vm106_vm0, %v416_v23, 0.0  ;;  %v353_v36 = vrot.slane %v352_v24, 2  ;;  %v424_v37 = vadd.f32 %v423_v25, %v422_v13 }
  0xf3   :  { %v377_v38 = vrot.slane %v376_v26, 2  ;;  %v448_v39 = vadd.f32 %v447_v27, %v446_v17  ;;  %v365_v40 = vrot.slane %v364_v28, 2  ;;  %v435_v41 = vrot.slane %v434_v29, 4 }
  0xf4   :  { %v388_v42 = vadd.f32 %v387_v32, %v386_v22  ;;  %v458_v43 = vadd.f32 %v457_v33, %v456_v59  ;;  %v354_v50 = vadd.f32 %v353_v36, %v352_v24  ;;  %v425_v58 = vrot.slane %v424_v37, 2 }
  0xf5   :  { %v378_v60 = vadd.f32 %v377_v38, %v376_v26  ;;  %v449_v61 = vrot.slane %v448_v39, 2  ;;  %v366_v62 = vadd.f32 %v365_v40, %v364_v28  ;;  %v436_v1 = vadd.f32 %v435_v41, %v434_v29 }
  0xf6   :  { %v389_v2 = vrot.slane %v388_v42, 2  ;;  %v459_v5 = vrot.slane %v458_v43, 4  ;;  %v355_v57 = vrot.slane %v354_v50, 1  ;;  %v426_v6 = vadd.f32 %v425_v58, %v424_v37 }
  0xf7   :  { %v379_v7 = vrot.slane %v378_v60, 1  ;;  %v450_v8 = vadd.f32 %v449_v61, %v448_v39  ;;  %v367_v9 = vrot.slane %v366_v62, 1  ;;  %v437_v10 = vrot.slane %v436_v1, 2 }
  0xf8   :  { %v390_v11 = vadd.f32 %v389_v2, %v388_v42  ;;  %v460_v12 = vadd.f32 %v459_v5, %v458_v43  ;;  %v356_v13 = vadd.f32 %v355_v57, %v354_v50  ;;  %v427_v14 = vrot.slane %v426_v6, 1 }
  0xf9   :  { %v380_v17 = vadd.f32 %v379_v7, %v378_v60  ;;  %v451_v59 = vrot.slane %v450_v8, 1  ;;  %v368_v18 = vadd.f32 %v367_v9, %v366_v62  ;;  %v438_v21 = vadd.f32 %v437_v10, %v436_v1 }
  0xfa   :  { %v391_v22 = vrot.slane %v390_v11, 1  ;;  %v461_v23 = vrot.slane %v460_v12, 2  ;;  %v428_v24 = vadd.f32 %v427_v14, %v426_v6  ;;  %v864_v2 = vmov 1966171168  }
  0xfb   :  { %v452_v25 = vadd.f32 %v451_v59, %v450_v8  ;;  %v465_v26 = vadd.f32 %v380_v17, %v356_v13  ;;  %v439_v27 = vrot.slane %v438_v21, 1  ;;  %v485_v5 = vunpack.c.l.s4 %v864_v2  ;;  %v29_v13 = vld [vmem:[%s1359_s3] ss:$2 sm:$0x3] }
  0xfc   :  { %v392_v28 = vadd.f32 %v391_v22, %v390_v11  ;;  %v462_v29 = vadd.f32 %v461_v23, %v460_v12  ;;  %v487_v57 = vlaneseq }
  0xfd   :  { %v467_v32 = vadd.f32 %v452_v25, %v428_v24  ;;  %v469_v33 = vmul.f32 0.0121951215, %v465_v26  ;;  %v440_v36 = vadd.f32 %v439_v27, %v438_v21  ;;  %v486_v6 = vunpack.c.0.s8 %v485_v5  ;;  %v740_v27 = vld [vmem:[%s1359_s3 + $0x1] ss:$2 sm:$0x3] }
  0xfe   :  { %v463_v37 = vrot.slane %v462_v29, 1  ;;  %v466_v38 = vadd.f32 %v392_v28, %v368_v18  ;;  %v488_v7 = vshrl.u32 %v487_v57, 7 }
  0xff   :  { %v471_v39 = vmul.f32 0.0121951215, %v467_v32  ;;  %v473_v40 = vmul.f32 %v469_v33, %v469_v33 }
 0x100   :  { %v464_v41 = vadd.f32 %v463_v37, %v462_v29  ;;  %v470_v42 = vmul.f32 0.0121951215, %v466_v38  ;;  %v489_v9 = vsub.s32 %v486_v6, %v488_v7  ;;  %v503_v17 = vsub.s32 0, %v488_v7 }
 0x101   :  { %v475_v43 = vsub.f32 %v471_v39, %v473_v40  ;;  %v507_v59 = vsub.s32 1, %v488_v7 }
 0x102   :  { %v468_v50 = vadd.f32 %v464_v41, %v440_v36  ;;  %v474_v58 = vmul.f32 %v470_v42, %v470_v42 }
 0x103   :  { %v477_v61 = vadd.f32 1e-05, %v475_v43 }
 0x104   :  { %v472_v60 = vmul.f32 0.0121951215, %v468_v50 }
 0x105   :  { %786 = vrsqrt.f32 %v477_v61 }
 0x106   :  { %v476_v62 = vsub.f32 %v472_v60, %v474_v58 }
 0x108   :  { %v478_v1 = vadd.f32 1e-05, %v476_v62 }
 0x10a   :  { %788 = vrsqrt.f32 %v478_v1 }
 0x112   :  { %v787_v8 = vpop.eup %786 }
 0x117   :  { %v789_v10 = vpop.eup %788 }
 0x118   :  { %v483_v11 = vcombine.low %v787_v8, %v789_v10 }
 0x11a   :  { %v490_v12 = vrot.slane %v483_v11, %v489_v9 }
 0x11c   :  { %v497_v14 = vrot.slane %v490_v12, %v489_v9 }
 0x11e   :  { %v499_v18 = vmul.f32 %v497_v14, %v29_v13 }
 0x120   :  { %v504_v21 = vrot.slane %v499_v18, %v503_v17  ;;  %v508_v22 = vrot.slane %v499_v18, %v507_v59 }
 0x122   :  { %v511_v23 = vmul.f32 %v504_v21, %v469_v33  ;;  %v512_v24 = vmul.f32 %v508_v22, %v470_v42  ;;  %v532_v29 = vmul.f32 %v504_v21, %v1026_v48  ;;  %v533_v32 = vmul.f32 %v508_v22, %v1030_v52 }
 0x123   :  { %v534_v36 = vmul.f32 %v504_v21, %v1038_v63  ;;  %v535_v37 = vmul.f32 %v508_v22, %v1042_v3  ;;  %v536_v38 = vmul.f32 %v504_v21, %v1066_v19  ;;  %v537_v33 = vmul.f32 %v508_v22, %v1074_v34 }
 0x124   :  { %v515_v25 = vcombine.low %v511_v23, %v512_v24  ;;  %v538_v39 = vmul.f32 %v504_v21, %v1084_v51  ;;  %v539_v41 = vmul.f32 %v508_v22, %v1088_v55  ;;  %v540_v42 = vmul.f32 %v504_v21, %v1106_v15 }
 0x125   :  { %v541_v43 = vmul.f32 %v508_v22, %v1114_v30  ;;  %v542_v48 = vmul.f32 %v504_v21, %v1124_v44  ;;  %v543_v52 = vmul.f32 %v508_v22, %v1128_v46  ;;  %v567_v63 = vmul.f32 %v504_v21, %v1028_v49 }
 0x126   :  { %v522_v26 = vrot.slane %v515_v25, %v489_v9  ;;  %v568_v3 = vmul.f32 %v508_v22, %v1032_v53  ;;  %v569_v34 = vmul.f32 %v504_v21, %v1040_v0  ;;  %v570_v51 = vmul.f32 %v508_v22, %v1044_v4 }
 0x127   :  { %v571_v55 = vmul.f32 %v504_v21, %v1068_v20  ;;  %v572_v15 = vmul.f32 %v508_v22, %v1076_v35  ;;  %v573_v30 = vmul.f32 %v504_v21, %v1086_v54  ;;  %v574_v44 = vmul.f32 %v508_v22, %v1090_v56 }
 0x128   :  { %v529_v28 = vrot.slane %v522_v26, %v489_v9  ;;  %v575_v46 = vmul.f32 %v504_v21, %v1108_v16  ;;  %v576_v49 = vmul.f32 %v508_v22, %v1116_v31  ;;  %v577_v53 = vmul.f32 %v504_v21, %v1126_v45 }
 0x129   :  { %v578_v58 = vmul.f32 %v508_v22, %v1130_v47 }
 0x12a   :  { %v531_v40 = vsub.f32 %v740_v27, %v529_v28 }
 0x12c   :  { %v548_v19 = vrot.slane %v531_v40, %v503_v17  ;;  %v552_v50 = vrot.slane %v531_v40, %v507_v59 }
 0x12e   :  { %v1184_v60 = vadd.f32 %v548_v19, %v532_v29  ;;  %v1186_v0 = vadd.f32 %v552_v50, %v533_v32  ;;  %v1188_v4 = vadd.f32 %v548_v19, %v534_v36  ;;  %v1190_v20 = vadd.f32 %v552_v50, %v535_v37 }
 0x12f   :  { %v1192_v35 = vadd.f32 %v548_v19, %v536_v38  ;;  %v1194_v54 = vadd.f32 %v552_v50, %v537_v33  ;;  %v1196_v56 = vadd.f32 %v548_v19, %v538_v39  ;;  %v1198_v16 = vadd.f32 %v552_v50, %v539_v41 }
 0x130   :  { %v1200_v31 = vadd.f32 %v567_v63, %v548_v19  ;;  %v1202_v45 = vadd.f32 %v568_v3, %v552_v50  ;;  %v1204_v47 = vadd.f32 %v569_v34, %v548_v19  ;;  %v1206_v61 = vadd.f32 %v570_v51, %v552_v50 }
 0x131   :  { %v1208_v62 = vadd.f32 %v552_v50, %v541_v43  ;;  %v1210_v1 = vadd.f32 %v548_v19, %v542_v48  ;;  %v1212_v2 = vadd.f32 %v552_v50, %v543_v52  ;;  %v1214_v5 = vadd.f32 %v571_v55, %v548_v19 }
 0x132   :  { %v1216_v57 = vadd.f32 %v572_v15, %v552_v50  ;;  %v1218_v6 = vadd.f32 %v576_v49, %v552_v50  ;;  %v1220_v7 = vadd.f32 %v577_v53, %v548_v19  ;;  %v1222_v8 = vadd.f32 %v578_v58, %v552_v50 }
 0x133   :  { %v1224_v9 = vadd.f32 %v573_v30, %v548_v19  ;;  %v591_v10 = vsub.f32 %v1184_v60, %v1200_v31  ;;  %v592_v11 = vsub.f32 %v1186_v0, %v1202_v45  ;;  %v593_v12 = vsub.f32 %v1188_v4, %v1204_v47 }
 0x134   :  { %v1232_v13 = vadd.f32 %v548_v19, %v540_v42  ;;  %v1234_v14 = vadd.f32 %v574_v44, %v552_v50  ;;  %v1236_v17 = vadd.f32 %v575_v46, %v548_v19  ;;  %v594_v59 = vsub.f32 %v1190_v20, %v1206_v61 }
 0x135   :  { %v595_v18 = vsub.f32 %v1192_v35, %v1214_v5  ;;  %v600_v21 = vsub.f32 %v1208_v62, %v1218_v6  ;;  %v601_v22 = vsub.f32 %v1210_v1, %v1220_v7  ;;  %v602_v23 = vsub.f32 %v1212_v2, %v1222_v8 }
 0x136   :  { %v596_v24 = vsub.f32 %v1194_v54, %v1216_v57  ;;  %v603_v25 = vmul.f32 0.5, %v591_v10  ;;  %v604_v26 = vmul.f32 0.5, %v592_v11  ;;  %v597_v27 = vsub.f32 %v1196_v56, %v1224_v9 }
 0x137   :  { %v605_v28 = vmul.f32 0.5, %v593_v12  ;;  %v598_v29 = vsub.f32 %v1198_v16, %v1234_v14  ;;  %v606_v32 = vmul.f32 0.5, %v594_v59  ;;  %v599_v36 = vsub.f32 %v1232_v13, %v1236_v17 }
 0x138   :  { %v607_v37 = vmul.f32 0.5, %v595_v18  ;;  %790 = vtanh.f32 %v603_v25  ;;  %v608_v38 = vmul.f32 0.5, %v596_v24  ;;  %v609_v33 = vmul.f32 0.5, %v597_v27 }
 0x139   :  { %792 = vtanh.f32 %v604_v26  ;;  %v610_v39 = vmul.f32 0.5, %v598_v29  ;;  %v611_v40 = vmul.f32 0.5, %v599_v36  ;;  %v612_v41 = vmul.f32 0.5, %v600_v21 }
 0x13a   :  { %794 = vtanh.f32 %v605_v28  ;;  %v613_v42 = vmul.f32 0.5, %v601_v22  ;;  %v614_v43 = vmul.f32 0.5, %v602_v23 }
 0x13b   :  { %796 = vtanh.f32 %v606_v32 }
 0x13c   :  { %798 = vtanh.f32 %v607_v37 }
 0x13d   :  { %800 = vtanh.f32 %v608_v38 }
 0x13e   :  { %802 = vtanh.f32 %v609_v33 }
 0x13f   :  { %804 = vtanh.f32 %v610_v39 }
 0x140   :  { %806 = vtanh.f32 %v611_v40 }
 0x141   :  { %808 = vtanh.f32 %v612_v41 }
 0x142   :  { %810 = vtanh.f32 %v613_v42 }
 0x143   :  { %812 = vtanh.f32 %v614_v43 }
 0x145   :  { %v791_v48 = vpop.eup %790 }
 0x146   :  { %v793_v52 = vpop.eup %792  ;;  %v627_v63 = vadd.f32 1.0, %v791_v48 }
 0x147   :  { %v795_v3 = vpop.eup %794  ;;  %v628_v19 = vadd.f32 1.0, %v793_v52 }
 0x148   :  { %v797_v50 = vpop.eup %796  ;;  %v629_v34 = vadd.f32 1.0, %v795_v3  ;;  %v1256_v51 = vmul.f32 0.5, %v627_v63 }
 0x149   :  { %v799_v55 = vpop.eup %798  ;;  %v630_v15 = vadd.f32 1.0, %v797_v50  ;;  %v640_v30 = vmul.f32 0.5, %v628_v19 }
 0x14a   :  { %v801_v44 = vpop.eup %800  ;;  %v631_v46 = vadd.f32 1.0, %v799_v55  ;;  %v641_v49 = vmul.f32 0.5, %v629_v34  ;;  %v651_v53 = vmul.f32 %v1256_v51, %v1184_v60  ;;  %v687_v43 = vsub.f32 1.0, %v1256_v51 }
 0x14b   :  { %v803_v58 = vpop.eup %802  ;;  %v632_v10 = vadd.f32 1.0, %v801_v44  ;;  %v642_v11 = vmul.f32 0.5, %v630_v15  ;;  %v652_v12 = vmul.f32 %v640_v30, %v1186_v0  ;;  %v688_v52 = vsub.f32 1.0, %v640_v30 }
 0x14c   :  { %v805_v59 = vpop.eup %804  ;;  %v633_v18 = vadd.f32 1.0, %v803_v58  ;;  %v643_v21 = vmul.f32 0.5, %v631_v46  ;;  %v653_v22 = vmul.f32 %v641_v49, %v1188_v4  ;;  %814 = vtanh.f32 %v651_v53 }
 0x14d   :  { %v807_v23 = vpop.eup %806  ;;  %v634_v24 = vadd.f32 1.0, %v805_v59  ;;  %v644_v25 = vmul.f32 0.5, %v632_v10  ;;  %v654_v26 = vmul.f32 %v642_v11, %v1190_v20  ;;  %816 = vtanh.f32 %v652_v12 }
 0x14e   :  { %v809_v27 = vpop.eup %808  ;;  %v635_v28 = vadd.f32 1.0, %v807_v23  ;;  %v645_v60 = vmul.f32 0.5, %v633_v18  ;;  %v655_v29 = vmul.f32 %v643_v21, %v1192_v35  ;;  %818 = vtanh.f32 %v653_v22 }
 0x14f   :  { %v811_v32 = vpop.eup %810  ;;  %v636_v0 = vadd.f32 1.0, %v809_v27  ;;  %v646_v36 = vmul.f32 0.5, %v634_v24  ;;  %v656_v37 = vmul.f32 %v644_v25, %v1194_v54  ;;  %820 = vtanh.f32 %v654_v26 }
 0x150   :  { %v813_v4 = vpop.eup %812  ;;  %v637_v38 = vadd.f32 1.0, %v811_v32  ;;  %v647_v33 = vmul.f32 0.5, %v635_v28  ;;  %v657_v39 = vmul.f32 %v645_v60, %v1196_v56  ;;  %822 = vtanh.f32 %v655_v29 }
 0x151   :  { %v638_v20 = vadd.f32 1.0, %v813_v4  ;;  %v648_v40 = vmul.f32 0.5, %v636_v0  ;;  %v658_v41 = vmul.f32 %v646_v36, %v1198_v16  ;;  %824 = vtanh.f32 %v656_v37 }
 0x152   :  { %v649_v42 = vmul.f32 0.5, %v637_v38  ;;  %v659_v35 = vmul.f32 %v647_v33, %v1232_v13  ;;  %826 = vtanh.f32 %v657_v39  ;;  %v689_v56 = vsub.f32 1.0, %v641_v49 }
 0x153   :  { %v650_v48 = vmul.f32 0.5, %v638_v20  ;;  %v660_v54 = vmul.f32 %v648_v40, %v1208_v62  ;;  %828 = vtanh.f32 %v658_v41  ;;  %v690_v16 = vsub.f32 1.0, %v642_v11 }
 0x154   :  { %v661_v63 = vmul.f32 %v649_v42, %v1210_v1  ;;  %830 = vtanh.f32 %v659_v35  ;;  %v691_v19 = vsub.f32 1.0, %v643_v21  ;;  %v692_v50 = vsub.f32 1.0, %v644_v25 }
 0x155   :  { %v662_v3 = vmul.f32 %v650_v48, %v1212_v2  ;;  %832 = vtanh.f32 %v660_v54  ;;  %v696_v13 = vsub.f32 1.0, %v648_v40  ;;  %v697_v34 = vsub.f32 1.0, %v649_v42 }
 0x156   :  { %834 = vtanh.f32 %v661_v63  ;;  %v698_v51 = vsub.f32 1.0, %v650_v48  ;;  %v699_v55 = vmul.f32 %v687_v43, %v1200_v31  ;;  %v700_v62 = vmul.f32 %v688_v52, %v1202_v45 }
 0x157   :  { %836 = vtanh.f32 %v662_v3  ;;  %v693_v15 = vsub.f32 1.0, %v645_v60  ;;  %v701_v1 = vmul.f32 %v689_v56, %v1204_v47  ;;  %v694_v44 = vsub.f32 1.0, %v646_v36 }
 0x158   :  { %v695_v46 = vsub.f32 1.0, %v647_v33  ;;  %v702_v2 = vmul.f32 %v690_v16, %v1206_v61  ;;  %v708_v49 = vmul.f32 %v696_v13, %v1218_v6  ;;  %v703_v58 = vmul.f32 %v691_v19, %v1214_v5 }
 0x159   :  { %v815_v30 = vpop.eup %814  ;;  %v709_v31 = vmul.f32 %v697_v34, %v1220_v7  ;;  %v710_v45 = vmul.f32 %v698_v51, %v1222_v8  ;;  %838 = vtanh.f32 %v699_v55  ;;  %v704_v61 = vmul.f32 %v692_v50, %v1216_v57 }
 0x15a   :  { %v817_v53 = vpop.eup %816  ;;  %675 = vst [vmem:[%s1360_s4] sm:$0xff] %v815_v30  ;;  %840 = vtanh.f32 %v700_v62  ;;  %v705_v5 = vmul.f32 %v693_v15, %v1224_v9  ;;  %v706_v8 = vmul.f32 %v694_v44, %v1234_v14  ;;  %v707_v57 = vmul.f32 %v695_v46, %v1236_v17 }
 0x15b   :  { %v819_v47 = vpop.eup %818  ;;  %676 = vst [vmem:[%s1360_s4 + $0x8] sm:$0xff] %v817_v53  ;;  %842 = vtanh.f32 %v701_v1 }
 0x15c   :  { %v821_v6 = vpop.eup %820  ;;  %677 = vst [vmem:[%s1360_s4 + $0x10] sm:$0xff] %v819_v47  ;;  %844 = vtanh.f32 %v702_v2 }
 0x15d   :  { %v823_v7 = vpop.eup %822  ;;  %678 = vst [vmem:[%s1360_s4 + $0x18] sm:$0xff] %v821_v6  ;;  %846 = vtanh.f32 %v703_v58 }
 0x15e   :  { %v825_v10 = vpop.eup %824  ;;  %679 = vst [vmem:[%s1360_s4 + $0x20] sm:$0xff] %v823_v7  ;;  %848 = vtanh.f32 %v704_v61 }
 0x15f   :  { %v827_v11 = vpop.eup %826  ;;  %680 = vst [vmem:[%s1360_s4 + $0x28] sm:$0xff] %v825_v10  ;;  %850 = vtanh.f32 %v705_v5 }
 0x160   :  { %v829_v9 = vpop.eup %828  ;;  %681 = vst [vmem:[%s1360_s4 + $0x30] sm:$0xff] %v827_v11  ;;  %852 = vtanh.f32 %v706_v8 }
 0x161   :  { %v831_v14 = vpop.eup %830  ;;  %682 = vst [vmem:[%s1360_s4 + $0x38] sm:$0xff] %v829_v9  ;;  %854 = vtanh.f32 %v707_v57 }
 0x162   :  { %v833_v17 = vpop.eup %832  ;;  %683 = vst [vmem:[%s1360_s4 + $0x40] sm:$0xff] %v831_v14  ;;  %856 = vtanh.f32 %v708_v49 }
 0x163   :  { %v835_v12 = vpop.eup %834  ;;  %684 = vst [vmem:[%s1360_s4 + $0x48] sm:$0xff] %v833_v17  ;;  %858 = vtanh.f32 %v709_v31 }
 0x164   :  { %v837_v59 = vpop.eup %836  ;;  %685 = vst [vmem:[%s1360_s4 + $0x50] sm:$0x1] %v835_v12  ;;  %860 = vtanh.f32 %v710_v45 }
 0x165   :  { %686 = vst [vmem:[%s1360_s4 + $0x58] sm:$0x1] %v837_v59 }
 0x166   :  { %v839_v18 = vpop.eup %838 }
 0x167   :  { %v841_v21 = vpop.eup %840  ;;  %769 = vst [vmem:[%s1360_s4 + $0x60] sm:$0xff] %v839_v18 }
 0x168   :  { %v843_v22 = vpop.eup %842  ;;  %770 = vst [vmem:[%s1360_s4 + $0x68] sm:$0xff] %v841_v21 }
 0x169   :  { %v845_v23 = vpop.eup %844  ;;  %771 = vst [vmem:[%s1360_s4 + $0x70] sm:$0xff] %v843_v22 }
 0x16a   :  { %v847_v24 = vpop.eup %846  ;;  %772 = vst [vmem:[%s1360_s4 + $0x78] sm:$0xff] %v845_v23 }
 0x16b   :  { %v849_v25 = vpop.eup %848  ;;  %773 = vst [vmem:[%s1360_s4 + $0x80] sm:$0xff] %v847_v24 }
 0x16c   :  { %v851_v26 = vpop.eup %850  ;;  %774 = vst [vmem:[%s1360_s4 + $0x88] sm:$0xff] %v849_v25 }
 0x16d   :  { %v853_v27 = vpop.eup %852  ;;  %775 = vst [vmem:[%s1360_s4 + $0x90] sm:$0xff] %v851_v26 }
 0x16e   :  { %v855_v28 = vpop.eup %854  ;;  %776 = vst [vmem:[%s1360_s4 + $0x98] sm:$0xff] %v853_v27 }
 0x16f   :  { %v857_v60 = vpop.eup %856  ;;  %777 = vst [vmem:[%s1360_s4 + $0xa0] sm:$0xff] %v855_v28 }
 0x170   :  { %v859_v29 = vpop.eup %858  ;;  %778 = vst [vmem:[%s1360_s4 + $0xa8] sm:$0xff] %v857_v60 }
 0x171   :  { %v861_v32 = vpop.eup %860  ;;  %779 = vst [vmem:[%s1360_s4 + $0xb0] sm:$0x1] %v859_v29 }
 0x172   :  { %780 = vst [vmem:[%s1360_s4 + $0xb8] sm:$0x1] %v861_v32 }

</bundles_post_ra>
